<compile_context>
chip_gen: v6e
topology: v6e:2x2x1
jax: 0.10.0
libtpu: 0.0.40
codegen_flags: <defaults>
</compile_context>

<pallas_src>
import functools

import jax
import jax.numpy as jnp
import numpy as np
from jax.experimental import pallas as pl
from jax.experimental.pallas import tpu as pltpu


# ----------------------------------------------------------------------------
# Fused kernel: for batch element b
#   rows [0, P)      <- relu(prompt @ W1 + b1) @ W2 + b2 + prompt   (ResMLP)
#   rows [P, P+S)    <- emb_table[source_id[b, :]]                  (HBM gather)
# ----------------------------------------------------------------------------
def _fused_kernel(S, P, ids_ref, prompt_ref, w1_ref, b1_ref, w2_ref, b2_ref,
                  emb_hbm, out_ref, ebuf, sems):
    b = pl.program_id(0)

    # 1) Kick off all S row-gather DMAs (scattered HBM rows -> VMEM scratch).
    #    They overlap with the MLP compute below.
    copies = []
    for s in range(S):
        row = ids_ref[b * S + s]                      # scalar read from SMEM
        cp = pltpu.make_async_copy(
            emb_hbm.at[pl.ds(row, 1), :],             # (1, N) row in HBM
            ebuf.at[pl.ds(s, 1), :],                  # (1, N) slot in VMEM
            sems.at[s])
        cp.start()
        copies.append(cp)

    # 2) Prompt ResMLP. It is tiny (P=8 rows), so it is recomputed per batch
    #    element; this keeps the grid axis free of cross-step scratch state so
    #    it can be safely marked "parallel" (v7x megacore), and the work hides
    #    behind the gather DMAs anyway.
    p = prompt_ref[...].astype(jnp.float32)
    h = jnp.dot(p, w1_ref[...].astype(jnp.float32),
                preferred_element_type=jnp.float32) + b1_ref[...].astype(jnp.float32)
    h = jnp.maximum(h, 0.0)                           # ReLU (VPU)
    y = jnp.dot(h, w2_ref[...].astype(jnp.float32),
                preferred_element_type=jnp.float32) + b2_ref[...].astype(jnp.float32)
    out_ref[0, :P, :] = (y + p).astype(out_ref.dtype)  # residual + prompt rows

    # 3) Wait for the gathered rows and store them as one (S, N) slab
    #    (full (8,128)-aligned vreg stores, no per-row masked vst.msk).
    for cp in copies:
        cp.wait()
    out_ref[0, P:, :] = ebuf[...].astype(out_ref.dtype)


# ----------------------------------------------------------------------------
# SumPPModel.forward (the parts computable without the full T5 basemodel):
#   prompt' = prefix_mlp(prompt)
#   inputs_embeds = concat(prompt'.repeat(k,1,1), shared(source_id)), dim=1)
#   source_mask_updated = concat(source_mask[0,0].repeat(k, P), source_mask), dim=1)
# ----------------------------------------------------------------------------
def sum_pp_forward(source_id, source_mask, prompt, w1, b1, w2, b2, emb_table):
    k, S = source_id.shape
    P, N = prompt.shape
    H = w1.shape[1]

    kernel = functools.partial(_fused_kernel, S, P)

    grid_spec = pltpu.PrefetchScalarGridSpec(
        num_scalar_prefetch=1,                        # flattened ids -> SMEM
        grid=(k,),
        in_specs=[
            pl.BlockSpec((P, N), lambda b, ids: (0, 0)),   # prompt
            pl.BlockSpec((N, H), lambda b, ids: (0, 0)),   # W1
            pl.BlockSpec((1, H), lambda b, ids: (0, 0)),   # b1
            pl.BlockSpec((H, N), lambda b, ids: (0, 0)),   # W2
            pl.BlockSpec((1, N), lambda b, ids: (0, 0)),   # b2
            pl.BlockSpec(memory_space=pl.ANY),             # embedding table (HBM)
        ],
        out_specs=pl.BlockSpec((1, P + S, N), lambda b, ids: (b, 0, 0)),
        scratch_shapes=[
            pltpu.VMEM((S, N), emb_table.dtype),           # gathered-row buffer
            pltpu.SemaphoreType.DMA((S,)),                 # one sem per row DMA
        ],
    )

    inputs_embeds = pl.pallas_call(
        kernel,
        grid_spec=grid_spec,
        out_shape=jax.ShapeDtypeStruct((k, P + S, N), prompt.dtype),
        compiler_params=pltpu.CompilerParams(
            dimension_semantics=("parallel",)),            # 2x on v7x's 2 TCs
    )(source_id.reshape(-1).astype(jnp.int32),
      prompt, w1, b1, w2, b2, emb_table)

    # return_prompt == the MLP'ed prompt; it is rows [0, P) of every batch
    # element, so slice it back out instead of adding an extra kernel output.
    prompt_out = inputs_embeds[0, :P, :]

    # Attention-mask extension: pure scalar glue, plain JAX.
    mask_prefix = jnp.broadcast_to(source_mask[0, 0], (k, P)).astype(source_mask.dtype)
    source_mask_updated = jnp.concatenate([mask_prefix, source_mask], axis=1)

    # TODO(synk): encoder_outputs / seq2seq loss require the full basemodel (T5).
    return inputs_embeds, source_mask_updated, prompt_out


if __name__ == "__main__":
    # Small synthetic config consistent with the module:
    #   vocab V=64, embed N=128, prompt_token_num P=8, mlp_bottleneck_size H=64,
    #   batch k=2, source seq S=8.
    V, N, P, H, k, S = 64, 128, 8, 64, 2, 8

    key = jax.random.PRNGKey(0)
    k_emb, k_prompt, k_w1, k_b1, k_w2, k_b2, k_ids = jax.random.split(key, 7)

    emb_table = jax.random.normal(k_emb, (V, N), dtype=jnp.float32) * 0.02
    # init_new_prompt: rows sampled from the embedding table -> just take rows 0..P-1
    prompt = emb_table[:P]
    w1 = jax.random.normal(k_w1, (N, H), dtype=jnp.float32) * 0.05
    b1 = jax.random.normal(k_b1, (1, H), dtype=jnp.float32) * 0.01
    w2 = jax.random.normal(k_w2, (H, N), dtype=jnp.float32) * 0.05
    b2 = jax.random.normal(k_b2, (1, N), dtype=jnp.float32) * 0.01

    source_id = jax.random.randint(k_ids, (k, S), 0, V, dtype=jnp.int32)
    source_mask = jnp.ones((k, S), dtype=jnp.float32)

    inputs_embeds, mask_upd, prompt_out = jax.block_until_ready(
        sum_pp_forward(source_id, source_mask, prompt, w1, b1, w2, b2, emb_table)
    )

    # Pure-JAX reference check.
    prompt_ref = jnp.maximum(prompt @ w1 + b1, 0.0) @ w2 + b2 + prompt
    emb_ref = jnp.take(emb_table, source_id.reshape(-1), axis=0).reshape(k, S, N)
    inputs_ref = jnp.concatenate(
        [jnp.broadcast_to(prompt_ref[None], (k, P, N)), emb_ref], axis=1
    )
    mask_ref = jnp.concatenate(
        [jnp.broadcast_to(source_mask[0, 0], (k, P)), source_mask], axis=1
    )
    np.testing.assert_allclose(np.asarray(prompt_out), np.asarray(prompt_ref),
                               rtol=1e-5, atol=1e-5)
    np.testing.assert_allclose(np.asarray(inputs_embeds), np.asarray(inputs_ref),
                               rtol=1e-5, atol=1e-5)
    np.testing.assert_allclose(np.asarray(mask_upd), np.asarray(mask_ref),
                               rtol=0, atol=0)
    assert mask_upd.shape == (k, P + S)

    print("KERNEL_OK")
</pallas_src>

<mosaic_0001>
module attributes {stable_mosaic.version = 11 : i64} {
  func.func @_fused_kernel(%arg0: i32, %arg1: memref<16xi32, #tpu.memory_space<smem>>, %arg2: memref<8x128xf32, #tpu.memory_space<vmem>>, %arg3: memref<128x64xf32, #tpu.memory_space<vmem>>, %arg4: memref<1x64xf32, #tpu.memory_space<vmem>>, %arg5: memref<64x128xf32, #tpu.memory_space<vmem>>, %arg6: memref<1x128xf32, #tpu.memory_space<vmem>>, %arg7: memref<64x128xf32, #tpu.memory_space<any>>, %arg8: memref<1x16x128xf32, #tpu.memory_space<vmem>>, %arg9: memref<8x128xf32, #tpu.memory_space<vmem>>, %arg10: memref<8x!tpu.dma_semaphore, #tpu.memory_space<semaphore_mem>>) attributes {dimension_semantics = [#tpu.dimension_semantics<parallel>], iteration_bounds = array<i64: 2>, scalar_prefetch = 1 : i64, scratch_operands = 2 : i64, tpu.core_type = #tpu.core_type<tc>, window_params = [{pipeline_mode = #tpu.pipeline_mode<synchronous>, transform_indices = @transform_0, window_bounds = array<i64: 8, 128>}, {pipeline_mode = #tpu.pipeline_mode<synchronous>, transform_indices = @transform_1, window_bounds = array<i64: 128, 64>}, {pipeline_mode = #tpu.pipeline_mode<synchronous>, transform_indices = @transform_2, window_bounds = array<i64: 1, 64>}, {pipeline_mode = #tpu.pipeline_mode<synchronous>, transform_indices = @transform_3, window_bounds = array<i64: 64, 128>}, {pipeline_mode = #tpu.pipeline_mode<synchronous>, transform_indices = @transform_4, window_bounds = array<i64: 1, 128>}, {}, {transform_indices = @transform_6, window_bounds = array<i64: 1, 16, 128>}]} {
    %c8_i32 = arith.constant 8 : i32
    %0 = arith.muli %arg0, %c8_i32 : i32
    %c0_i32 = arith.constant 0 : i32
    %1 = arith.addi %0, %c0_i32 : i32
    %2 = arith.index_cast %1 : i32 to index
    %3 = memref.load %arg1[%2] : memref<16xi32, #tpu.memory_space<smem>>
    %c0_i32_0 = arith.constant 0 : i32
    %c0_i32_1 = arith.constant 0 : i32
    %4 = tpu.memref_slice %arg7[%3, %c0_i32_1] : memref<64x128xf32, #tpu.memory_space<any>> -> memref<1x128xf32, #tpu.memory_space<any>>
    %c0_i32_2 = arith.constant 0 : i32
    %c0_i32_3 = arith.constant 0 : i32
    %5 = tpu.memref_slice %arg9[%c0_i32_2, %c0_i32_3] : memref<8x128xf32, #tpu.memory_space<vmem>> -> memref<1x128xf32, #tpu.memory_space<vmem>>
    %6 = tpu.memref_slice %arg10[%c0_i32_0] : memref<8x!tpu.dma_semaphore, #tpu.memory_space<semaphore_mem>> -> memref<1x!tpu.dma_semaphore, #tpu.memory_space<semaphore_mem>>
    %7 = tpu.memref_squeeze %6 : memref<1x!tpu.dma_semaphore, #tpu.memory_space<semaphore_mem>> -> memref<!tpu.dma_semaphore, #tpu.memory_space<semaphore_mem>>
    tpu.enqueue_dma source(%4 : memref<1x128xf32, #tpu.memory_space<any>>) target(%5 : memref<1x128xf32, #tpu.memory_space<vmem>>) target_semaphore(%7 : memref<!tpu.dma_semaphore, #tpu.memory_space<semaphore_mem>>)
    %c8_i32_4 = arith.constant 8 : i32
    %8 = arith.muli %arg0, %c8_i32_4 : i32
    %c1_i32 = arith.constant 1 : i32
    %9 = arith.addi %8, %c1_i32 : i32
    %10 = arith.index_cast %9 : i32 to index
    %11 = memref.load %arg1[%10] : memref<16xi32, #tpu.memory_space<smem>>
    %c1_i32_5 = arith.constant 1 : i32
    %c0_i32_6 = arith.constant 0 : i32
    %12 = tpu.memref_slice %arg7[%11, %c0_i32_6] : memref<64x128xf32, #tpu.memory_space<any>> -> memref<1x128xf32, #tpu.memory_space<any>>
    %c1_i32_7 = arith.constant 1 : i32
    %c0_i32_8 = arith.constant 0 : i32
    %13 = tpu.memref_slice %arg9[%c1_i32_7, %c0_i32_8] : memref<8x128xf32, #tpu.memory_space<vmem>> -> memref<1x128xf32, #tpu.memory_space<vmem>>
    %14 = tpu.memref_slice %arg10[%c1_i32_5] : memref<8x!tpu.dma_semaphore, #tpu.memory_space<semaphore_mem>> -> memref<1x!tpu.dma_semaphore, #tpu.memory_space<semaphore_mem>>
    %15 = tpu.memref_squeeze %14 : memref<1x!tpu.dma_semaphore, #tpu.memory_space<semaphore_mem>> -> memref<!tpu.dma_semaphore, #tpu.memory_space<semaphore_mem>>
    tpu.enqueue_dma source(%12 : memref<1x128xf32, #tpu.memory_space<any>>) target(%13 : memref<1x128xf32, #tpu.memory_space<vmem>>) target_semaphore(%15 : memref<!tpu.dma_semaphore, #tpu.memory_space<semaphore_mem>>)
    %c8_i32_9 = arith.constant 8 : i32
    %16 = arith.muli %arg0, %c8_i32_9 : i32
    %c2_i32 = arith.constant 2 : i32
    %17 = arith.addi %16, %c2_i32 : i32
    %18 = arith.index_cast %17 : i32 to index
    %19 = memref.load %arg1[%18] : memref<16xi32, #tpu.memory_space<smem>>
    %c2_i32_10 = arith.constant 2 : i32
    %c0_i32_11 = arith.constant 0 : i32
    %20 = tpu.memref_slice %arg7[%19, %c0_i32_11] : memref<64x128xf32, #tpu.memory_space<any>> -> memref<1x128xf32, #tpu.memory_space<any>>
    %c2_i32_12 = arith.constant 2 : i32
    %c0_i32_13 = arith.constant 0 : i32
    %21 = tpu.memref_slice %arg9[%c2_i32_12, %c0_i32_13] : memref<8x128xf32, #tpu.memory_space<vmem>> -> memref<1x128xf32, #tpu.memory_space<vmem>>
    %22 = tpu.memref_slice %arg10[%c2_i32_10] : memref<8x!tpu.dma_semaphore, #tpu.memory_space<semaphore_mem>> -> memref<1x!tpu.dma_semaphore, #tpu.memory_space<semaphore_mem>>
    %23 = tpu.memref_squeeze %22 : memref<1x!tpu.dma_semaphore, #tpu.memory_space<semaphore_mem>> -> memref<!tpu.dma_semaphore, #tpu.memory_space<semaphore_mem>>
    tpu.enqueue_dma source(%20 : memref<1x128xf32, #tpu.memory_space<any>>) target(%21 : memref<1x128xf32, #tpu.memory_space<vmem>>) target_semaphore(%23 : memref<!tpu.dma_semaphore, #tpu.memory_space<semaphore_mem>>)
    %c8_i32_14 = arith.constant 8 : i32
    %24 = arith.muli %arg0, %c8_i32_14 : i32
    %c3_i32 = arith.constant 3 : i32
    %25 = arith.addi %24, %c3_i32 : i32
    %26 = arith.index_cast %25 : i32 to index
    %27 = memref.load %arg1[%26] : memref<16xi32, #tpu.memory_space<smem>>
    %c3_i32_15 = arith.constant 3 : i32
    %c0_i32_16 = arith.constant 0 : i32
    %28 = tpu.memref_slice %arg7[%27, %c0_i32_16] : memref<64x128xf32, #tpu.memory_space<any>> -> memref<1x128xf32, #tpu.memory_space<any>>
    %c3_i32_17 = arith.constant 3 : i32
    %c0_i32_18 = arith.constant 0 : i32
    %29 = tpu.memref_slice %arg9[%c3_i32_17, %c0_i32_18] : memref<8x128xf32, #tpu.memory_space<vmem>> -> memref<1x128xf32, #tpu.memory_space<vmem>>
    %30 = tpu.memref_slice %arg10[%c3_i32_15] : memref<8x!tpu.dma_semaphore, #tpu.memory_space<semaphore_mem>> -> memref<1x!tpu.dma_semaphore, #tpu.memory_space<semaphore_mem>>
    %31 = tpu.memref_squeeze %30 : memref<1x!tpu.dma_semaphore, #tpu.memory_space<semaphore_mem>> -> memref<!tpu.dma_semaphore, #tpu.memory_space<semaphore_mem>>
    tpu.enqueue_dma source(%28 : memref<1x128xf32, #tpu.memory_space<any>>) target(%29 : memref<1x128xf32, #tpu.memory_space<vmem>>) target_semaphore(%31 : memref<!tpu.dma_semaphore, #tpu.memory_space<semaphore_mem>>)
    %c8_i32_19 = arith.constant 8 : i32
    %32 = arith.muli %arg0, %c8_i32_19 : i32
    %c4_i32 = arith.constant 4 : i32
    %33 = arith.addi %32, %c4_i32 : i32
    %34 = arith.index_cast %33 : i32 to index
    %35 = memref.load %arg1[%34] : memref<16xi32, #tpu.memory_space<smem>>
    %c4_i32_20 = arith.constant 4 : i32
    %c0_i32_21 = arith.constant 0 : i32
    %36 = tpu.memref_slice %arg7[%35, %c0_i32_21] : memref<64x128xf32, #tpu.memory_space<any>> -> memref<1x128xf32, #tpu.memory_space<any>>
    %c4_i32_22 = arith.constant 4 : i32
    %c0_i32_23 = arith.constant 0 : i32
    %37 = tpu.memref_slice %arg9[%c4_i32_22, %c0_i32_23] : memref<8x128xf32, #tpu.memory_space<vmem>> -> memref<1x128xf32, #tpu.memory_space<vmem>>
    %38 = tpu.memref_slice %arg10[%c4_i32_20] : memref<8x!tpu.dma_semaphore, #tpu.memory_space<semaphore_mem>> -> memref<1x!tpu.dma_semaphore, #tpu.memory_space<semaphore_mem>>
    %39 = tpu.memref_squeeze %38 : memref<1x!tpu.dma_semaphore, #tpu.memory_space<semaphore_mem>> -> memref<!tpu.dma_semaphore, #tpu.memory_space<semaphore_mem>>
    tpu.enqueue_dma source(%36 : memref<1x128xf32, #tpu.memory_space<any>>) target(%37 : memref<1x128xf32, #tpu.memory_space<vmem>>) target_semaphore(%39 : memref<!tpu.dma_semaphore, #tpu.memory_space<semaphore_mem>>)
    %c8_i32_24 = arith.constant 8 : i32
    %40 = arith.muli %arg0, %c8_i32_24 : i32
    %c5_i32 = arith.constant 5 : i32
    %41 = arith.addi %40, %c5_i32 : i32
    %42 = arith.index_cast %41 : i32 to index
    %43 = memref.load %arg1[%42] : memref<16xi32, #tpu.memory_space<smem>>
    %c5_i32_25 = arith.constant 5 : i32
    %c0_i32_26 = arith.constant 0 : i32
    %44 = tpu.memref_slice %arg7[%43, %c0_i32_26] : memref<64x128xf32, #tpu.memory_space<any>> -> memref<1x128xf32, #tpu.memory_space<any>>
    %c5_i32_27 = arith.constant 5 : i32
    %c0_i32_28 = arith.constant 0 : i32
    %45 = tpu.memref_slice %arg9[%c5_i32_27, %c0_i32_28] : memref<8x128xf32, #tpu.memory_space<vmem>> -> memref<1x128xf32, #tpu.memory_space<vmem>>
    %46 = tpu.memref_slice %arg10[%c5_i32_25] : memref<8x!tpu.dma_semaphore, #tpu.memory_space<semaphore_mem>> -> memref<1x!tpu.dma_semaphore, #tpu.memory_space<semaphore_mem>>
    %47 = tpu.memref_squeeze %46 : memref<1x!tpu.dma_semaphore, #tpu.memory_space<semaphore_mem>> -> memref<!tpu.dma_semaphore, #tpu.memory_space<semaphore_mem>>
    tpu.enqueue_dma source(%44 : memref<1x128xf32, #tpu.memory_space<any>>) target(%45 : memref<1x128xf32, #tpu.memory_space<vmem>>) target_semaphore(%47 : memref<!tpu.dma_semaphore, #tpu.memory_space<semaphore_mem>>)
    %c8_i32_29 = arith.constant 8 : i32
    %48 = arith.muli %arg0, %c8_i32_29 : i32
    %c6_i32 = arith.constant 6 : i32
    %49 = arith.addi %48, %c6_i32 : i32
    %50 = arith.index_cast %49 : i32 to index
    %51 = memref.load %arg1[%50] : memref<16xi32, #tpu.memory_space<smem>>
    %c6_i32_30 = arith.constant 6 : i32
    %c0_i32_31 = arith.constant 0 : i32
    %52 = tpu.memref_slice %arg7[%51, %c0_i32_31] : memref<64x128xf32, #tpu.memory_space<any>> -> memref<1x128xf32, #tpu.memory_space<any>>
    %c6_i32_32 = arith.constant 6 : i32
    %c0_i32_33 = arith.constant 0 : i32
    %53 = tpu.memref_slice %arg9[%c6_i32_32, %c0_i32_33] : memref<8x128xf32, #tpu.memory_space<vmem>> -> memref<1x128xf32, #tpu.memory_space<vmem>>
    %54 = tpu.memref_slice %arg10[%c6_i32_30] : memref<8x!tpu.dma_semaphore, #tpu.memory_space<semaphore_mem>> -> memref<1x!tpu.dma_semaphore, #tpu.memory_space<semaphore_mem>>
    %55 = tpu.memref_squeeze %54 : memref<1x!tpu.dma_semaphore, #tpu.memory_space<semaphore_mem>> -> memref<!tpu.dma_semaphore, #tpu.memory_space<semaphore_mem>>
    tpu.enqueue_dma source(%52 : memref<1x128xf32, #tpu.memory_space<any>>) target(%53 : memref<1x128xf32, #tpu.memory_space<vmem>>) target_semaphore(%55 : memref<!tpu.dma_semaphore, #tpu.memory_space<semaphore_mem>>)
    %c8_i32_34 = arith.constant 8 : i32
    %56 = arith.muli %arg0, %c8_i32_34 : i32
    %c7_i32 = arith.constant 7 : i32
    %57 = arith.addi %56, %c7_i32 : i32
    %58 = arith.index_cast %57 : i32 to index
    %59 = memref.load %arg1[%58] : memref<16xi32, #tpu.memory_space<smem>>
    %c7_i32_35 = arith.constant 7 : i32
    %c0_i32_36 = arith.constant 0 : i32
    %60 = tpu.memref_slice %arg7[%59, %c0_i32_36] : memref<64x128xf32, #tpu.memory_space<any>> -> memref<1x128xf32, #tpu.memory_space<any>>
    %c7_i32_37 = arith.constant 7 : i32
    %c0_i32_38 = arith.constant 0 : i32
    %61 = tpu.memref_slice %arg9[%c7_i32_37, %c0_i32_38] : memref<8x128xf32, #tpu.memory_space<vmem>> -> memref<1x128xf32, #tpu.memory_space<vmem>>
    %62 = tpu.memref_slice %arg10[%c7_i32_35] : memref<8x!tpu.dma_semaphore, #tpu.memory_space<semaphore_mem>> -> memref<1x!tpu.dma_semaphore, #tpu.memory_space<semaphore_mem>>
    %63 = tpu.memref_squeeze %62 : memref<1x!tpu.dma_semaphore, #tpu.memory_space<semaphore_mem>> -> memref<!tpu.dma_semaphore, #tpu.memory_space<semaphore_mem>>
    tpu.enqueue_dma source(%60 : memref<1x128xf32, #tpu.memory_space<any>>) target(%61 : memref<1x128xf32, #tpu.memory_space<vmem>>) target_semaphore(%63 : memref<!tpu.dma_semaphore, #tpu.memory_space<semaphore_mem>>)
    %c0 = arith.constant 0 : index
    %c0_39 = arith.constant 0 : index
    %64 = vector.load %arg2[%c0, %c0_39] : memref<8x128xf32, #tpu.memory_space<vmem>>, vector<8x128xf32>
    %c0_40 = arith.constant 0 : index
    %c0_41 = arith.constant 0 : index
    %65 = vector.load %arg3[%c0_40, %c0_41] : memref<128x64xf32, #tpu.memory_space<vmem>>, vector<128x64xf32>
    %cst = arith.constant dense<0.000000e+00> : vector<8x64xf32>
    %66 = tpu.matmul %64, %65, %cst {dimension_numbers = #tpu.dot_dimension_numbers<[1], [0], [0], [1], [0, 0, 1, 1], [], []>} : vector<8x128xf32>, vector<128x64xf32>, vector<8x64xf32> -> vector<8x64xf32>
    %c0_42 = arith.constant 0 : index
    %c0_43 = arith.constant 0 : index
    %67 = vector.load %arg4[%c0_42, %c0_43] : memref<1x64xf32, #tpu.memory_space<vmem>>, vector<1x64xf32>
    %68 = vector.broadcast %67 : vector<1x64xf32> to vector<8x64xf32>
    %69 = arith.addf %66, %68 : vector<8x64xf32>
    %cst_44 = arith.constant 0.000000e+00 : f32
    %70 = vector.broadcast %cst_44 : f32 to vector<8x64xf32>
    %71 = arith.maximumf %69, %70 : vector<8x64xf32>
    %c0_45 = arith.constant 0 : index
    %c0_46 = arith.constant 0 : index
    %72 = vector.load %arg5[%c0_45, %c0_46] : memref<64x128xf32, #tpu.memory_space<vmem>>, vector<64x128xf32>
    %cst_47 = arith.constant dense<0.000000e+00> : vector<8x128xf32>
    %73 = tpu.matmul %71, %72, %cst_47 {dimension_numbers = #tpu.dot_dimension_numbers<[1], [0], [0], [1], [0, 0, 1, 1], [], []>} : vector<8x64xf32>, vector<64x128xf32>, vector<8x128xf32> -> vector<8x128xf32>
    %c0_48 = arith.constant 0 : index
    %c0_49 = arith.constant 0 : index
    %74 = vector.load %arg6[%c0_48, %c0_49] : memref<1x128xf32, #tpu.memory_space<vmem>>, vector<1x128xf32>
    %75 = vector.broadcast %74 : vector<1x128xf32> to vector<8x128xf32>
    %76 = arith.addf %73, %75 : vector<8x128xf32>
    %77 = arith.addf %76, %64 : vector<8x128xf32>
    %c0_50 = arith.constant 0 : index
    %c0_51 = arith.constant 0 : index
    %c0_52 = arith.constant 0 : index
    %78 = vector.load %arg8[%c0_50, %c0_51, %c0_52] : memref<1x16x128xf32, #tpu.memory_space<vmem>>, vector<1x8x128xf32>
    %79 = vector.shape_cast %78 : vector<1x8x128xf32> to vector<8x128xf32>
    %80 = vector.shape_cast %77 : vector<8x128xf32> to vector<1x8x128xf32>
    tpu.vector_store %arg8[%c0_50, %c0_51, %c0_52], %80 {strides = array<i32>} : memref<1x16x128xf32, #tpu.memory_space<vmem>>, vector<1x8x128xf32>,
    %c0_i32_53 = arith.constant 0 : i32
    %c0_i32_54 = arith.constant 0 : i32
    %81 = tpu.memref_slice %arg7[%3, %c0_i32_54] : memref<64x128xf32, #tpu.memory_space<any>> -> memref<1x128xf32, #tpu.memory_space<any>>
    %c0_i32_55 = arith.constant 0 : i32
    %c0_i32_56 = arith.constant 0 : i32
    %82 = tpu.memref_slice %arg9[%c0_i32_55, %c0_i32_56] : memref<8x128xf32, #tpu.memory_space<vmem>> -> memref<1x128xf32, #tpu.memory_space<vmem>>
    %83 = tpu.memref_slice %arg10[%c0_i32_53] : memref<8x!tpu.dma_semaphore, #tpu.memory_space<semaphore_mem>> -> memref<1x!tpu.dma_semaphore, #tpu.memory_space<semaphore_mem>>
    %84 = tpu.memref_squeeze %83 : memref<1x!tpu.dma_semaphore, #tpu.memory_space<semaphore_mem>> -> memref<!tpu.dma_semaphore, #tpu.memory_space<semaphore_mem>>
    tpu.wait_dma2 semaphore(%84 : memref<!tpu.dma_semaphore, #tpu.memory_space<semaphore_mem>>) src(%81 : memref<1x128xf32, #tpu.memory_space<any>>) dst(%82 : memref<1x128xf32, #tpu.memory_space<vmem>>)
    %c1_i32_57 = arith.constant 1 : i32
    %c0_i32_58 = arith.constant 0 : i32
    %85 = tpu.memref_slice %arg7[%11, %c0_i32_58] : memref<64x128xf32, #tpu.memory_space<any>> -> memref<1x128xf32, #tpu.memory_space<any>>
    %c1_i32_59 = arith.constant 1 : i32
    %c0_i32_60 = arith.constant 0 : i32
    %86 = tpu.memref_slice %arg9[%c1_i32_59, %c0_i32_60] : memref<8x128xf32, #tpu.memory_space<vmem>> -> memref<1x128xf32, #tpu.memory_space<vmem>>
    %87 = tpu.memref_slice %arg10[%c1_i32_57] : memref<8x!tpu.dma_semaphore, #tpu.memory_space<semaphore_mem>> -> memref<1x!tpu.dma_semaphore, #tpu.memory_space<semaphore_mem>>
    %88 = tpu.memref_squeeze %87 : memref<1x!tpu.dma_semaphore, #tpu.memory_space<semaphore_mem>> -> memref<!tpu.dma_semaphore, #tpu.memory_space<semaphore_mem>>
    tpu.wait_dma2 semaphore(%88 : memref<!tpu.dma_semaphore, #tpu.memory_space<semaphore_mem>>) src(%85 : memref<1x128xf32, #tpu.memory_space<any>>) dst(%86 : memref<1x128xf32, #tpu.memory_space<vmem>>)
    %c2_i32_61 = arith.constant 2 : i32
    %c0_i32_62 = arith.constant 0 : i32
    %89 = tpu.memref_slice %arg7[%19, %c0_i32_62] : memref<64x128xf32, #tpu.memory_space<any>> -> memref<1x128xf32, #tpu.memory_space<any>>
    %c2_i32_63 = arith.constant 2 : i32
    %c0_i32_64 = arith.constant 0 : i32
    %90 = tpu.memref_slice %arg9[%c2_i32_63, %c0_i32_64] : memref<8x128xf32, #tpu.memory_space<vmem>> -> memref<1x128xf32, #tpu.memory_space<vmem>>
    %91 = tpu.memref_slice %arg10[%c2_i32_61] : memref<8x!tpu.dma_semaphore, #tpu.memory_space<semaphore_mem>> -> memref<1x!tpu.dma_semaphore, #tpu.memory_space<semaphore_mem>>
    %92 = tpu.memref_squeeze %91 : memref<1x!tpu.dma_semaphore, #tpu.memory_space<semaphore_mem>> -> memref<!tpu.dma_semaphore, #tpu.memory_space<semaphore_mem>>
    tpu.wait_dma2 semaphore(%92 : memref<!tpu.dma_semaphore, #tpu.memory_space<semaphore_mem>>) src(%89 : memref<1x128xf32, #tpu.memory_space<any>>) dst(%90 : memref<1x128xf32, #tpu.memory_space<vmem>>)
    %c3_i32_65 = arith.constant 3 : i32
    %c0_i32_66 = arith.constant 0 : i32
    %93 = tpu.memref_slice %arg7[%27, %c0_i32_66] : memref<64x128xf32, #tpu.memory_space<any>> -> memref<1x128xf32, #tpu.memory_space<any>>
    %c3_i32_67 = arith.constant 3 : i32
    %c0_i32_68 = arith.constant 0 : i32
    %94 = tpu.memref_slice %arg9[%c3_i32_67, %c0_i32_68] : memref<8x128xf32, #tpu.memory_space<vmem>> -> memref<1x128xf32, #tpu.memory_space<vmem>>
    %95 = tpu.memref_slice %arg10[%c3_i32_65] : memref<8x!tpu.dma_semaphore, #tpu.memory_space<semaphore_mem>> -> memref<1x!tpu.dma_semaphore, #tpu.memory_space<semaphore_mem>>
    %96 = tpu.memref_squeeze %95 : memref<1x!tpu.dma_semaphore, #tpu.memory_space<semaphore_mem>> -> memref<!tpu.dma_semaphore, #tpu.memory_space<semaphore_mem>>
    tpu.wait_dma2 semaphore(%96 : memref<!tpu.dma_semaphore, #tpu.memory_space<semaphore_mem>>) src(%93 : memref<1x128xf32, #tpu.memory_space<any>>) dst(%94 : memref<1x128xf32, #tpu.memory_space<vmem>>)
    %c4_i32_69 = arith.constant 4 : i32
    %c0_i32_70 = arith.constant 0 : i32
    %97 = tpu.memref_slice %arg7[%35, %c0_i32_70] : memref<64x128xf32, #tpu.memory_space<any>> -> memref<1x128xf32, #tpu.memory_space<any>>
    %c4_i32_71 = arith.constant 4 : i32
    %c0_i32_72 = arith.constant 0 : i32
    %98 = tpu.memref_slice %arg9[%c4_i32_71, %c0_i32_72] : memref<8x128xf32, #tpu.memory_space<vmem>> -> memref<1x128xf32, #tpu.memory_space<vmem>>
    %99 = tpu.memref_slice %arg10[%c4_i32_69] : memref<8x!tpu.dma_semaphore, #tpu.memory_space<semaphore_mem>> -> memref<1x!tpu.dma_semaphore, #tpu.memory_space<semaphore_mem>>
    %100 = tpu.memref_squeeze %99 : memref<1x!tpu.dma_semaphore, #tpu.memory_space<semaphore_mem>> -> memref<!tpu.dma_semaphore, #tpu.memory_space<semaphore_mem>>
    tpu.wait_dma2 semaphore(%100 : memref<!tpu.dma_semaphore, #tpu.memory_space<semaphore_mem>>) src(%97 : memref<1x128xf32, #tpu.memory_space<any>>) dst(%98 : memref<1x128xf32, #tpu.memory_space<vmem>>)
    %c5_i32_73 = arith.constant 5 : i32
    %c0_i32_74 = arith.constant 0 : i32
    %101 = tpu.memref_slice %arg7[%43, %c0_i32_74] : memref<64x128xf32, #tpu.memory_space<any>> -> memref<1x128xf32, #tpu.memory_space<any>>
    %c5_i32_75 = arith.constant 5 : i32
    %c0_i32_76 = arith.constant 0 : i32
    %102 = tpu.memref_slice %arg9[%c5_i32_75, %c0_i32_76] : memref<8x128xf32, #tpu.memory_space<vmem>> -> memref<1x128xf32, #tpu.memory_space<vmem>>
    %103 = tpu.memref_slice %arg10[%c5_i32_73] : memref<8x!tpu.dma_semaphore, #tpu.memory_space<semaphore_mem>> -> memref<1x!tpu.dma_semaphore, #tpu.memory_space<semaphore_mem>>
    %104 = tpu.memref_squeeze %103 : memref<1x!tpu.dma_semaphore, #tpu.memory_space<semaphore_mem>> -> memref<!tpu.dma_semaphore, #tpu.memory_space<semaphore_mem>>
    tpu.wait_dma2 semaphore(%104 : memref<!tpu.dma_semaphore, #tpu.memory_space<semaphore_mem>>) src(%101 : memref<1x128xf32, #tpu.memory_space<any>>) dst(%102 : memref<1x128xf32, #tpu.memory_space<vmem>>)
    %c6_i32_77 = arith.constant 6 : i32
    %c0_i32_78 = arith.constant 0 : i32
    %105 = tpu.memref_slice %arg7[%51, %c0_i32_78] : memref<64x128xf32, #tpu.memory_space<any>> -> memref<1x128xf32, #tpu.memory_space<any>>
    %c6_i32_79 = arith.constant 6 : i32
    %c0_i32_80 = arith.constant 0 : i32
    %106 = tpu.memref_slice %arg9[%c6_i32_79, %c0_i32_80] : memref<8x128xf32, #tpu.memory_space<vmem>> -> memref<1x128xf32, #tpu.memory_space<vmem>>
    %107 = tpu.memref_slice %arg10[%c6_i32_77] : memref<8x!tpu.dma_semaphore, #tpu.memory_space<semaphore_mem>> -> memref<1x!tpu.dma_semaphore, #tpu.memory_space<semaphore_mem>>
    %108 = tpu.memref_squeeze %107 : memref<1x!tpu.dma_semaphore, #tpu.memory_space<semaphore_mem>> -> memref<!tpu.dma_semaphore, #tpu.memory_space<semaphore_mem>>
    tpu.wait_dma2 semaphore(%108 : memref<!tpu.dma_semaphore, #tpu.memory_space<semaphore_mem>>) src(%105 : memref<1x128xf32, #tpu.memory_space<any>>) dst(%106 : memref<1x128xf32, #tpu.memory_space<vmem>>)
    %c7_i32_81 = arith.constant 7 : i32
    %c0_i32_82 = arith.constant 0 : i32
    %109 = tpu.memref_slice %arg7[%59, %c0_i32_82] : memref<64x128xf32, #tpu.memory_space<any>> -> memref<1x128xf32, #tpu.memory_space<any>>
    %c7_i32_83 = arith.constant 7 : i32
    %c0_i32_84 = arith.constant 0 : i32
    %110 = tpu.memref_slice %arg9[%c7_i32_83, %c0_i32_84] : memref<8x128xf32, #tpu.memory_space<vmem>> -> memref<1x128xf32, #tpu.memory_space<vmem>>
    %111 = tpu.memref_slice %arg10[%c7_i32_81] : memref<8x!tpu.dma_semaphore, #tpu.memory_space<semaphore_mem>> -> memref<1x!tpu.dma_semaphore, #tpu.memory_space<semaphore_mem>>
    %112 = tpu.memref_squeeze %111 : memref<1x!tpu.dma_semaphore, #tpu.memory_space<semaphore_mem>> -> memref<!tpu.dma_semaphore, #tpu.memory_space<semaphore_mem>>
    tpu.wait_dma2 semaphore(%112 : memref<!tpu.dma_semaphore, #tpu.memory_space<semaphore_mem>>) src(%109 : memref<1x128xf32, #tpu.memory_space<any>>) dst(%110 : memref<1x128xf32, #tpu.memory_space<vmem>>)
    %c0_85 = arith.constant 0 : index
    %c0_86 = arith.constant 0 : index
    %113 = vector.load %arg9[%c0_85, %c0_86] : memref<8x128xf32, #tpu.memory_space<vmem>>, vector<8x128xf32>
    %c0_87 = arith.constant 0 : index
    %c8 = arith.constant 8 : index
    %c0_88 = arith.constant 0 : index
    %114 = vector.load %arg8[%c0_87, %c8, %c0_88] : memref<1x16x128xf32, #tpu.memory_space<vmem>>, vector<1x8x128xf32>
    %115 = vector.shape_cast %114 : vector<1x8x128xf32> to vector<8x128xf32>
    %116 = vector.shape_cast %113 : vector<8x128xf32> to vector<1x8x128xf32>
    tpu.vector_store %arg8[%c0_87, %c8, %c0_88], %116 {strides = array<i32>} : memref<1x16x128xf32, #tpu.memory_space<vmem>>, vector<1x8x128xf32>,
    return
  }
  func.func @transform_0(%arg0: i32, %arg1: memref<16xi32, #tpu.memory_space<smem>>) -> (i32, i32) {
    %c0_i32 = arith.constant 0 : i32
    %c0_i32_0 = arith.constant 0 : i32
    %c0_i32_1 = arith.constant 0 : i32
    return %c0_i32, %c0_i32_0 : i32, i32
  }
  func.func @transform_1(%arg0: i32, %arg1: memref<16xi32, #tpu.memory_space<smem>>) -> (i32, i32) {
    %c0_i32 = arith.constant 0 : i32
    %c0_i32_0 = arith.constant 0 : i32
    %c0_i32_1 = arith.constant 0 : i32
    return %c0_i32, %c0_i32_0 : i32, i32
  }
  func.func @transform_2(%arg0: i32, %arg1: memref<16xi32, #tpu.memory_space<smem>>) -> (i32, i32) {
    %c0_i32 = arith.constant 0 : i32
    %c0_i32_0 = arith.constant 0 : i32
    %c0_i32_1 = arith.constant 0 : i32
    return %c0_i32, %c0_i32_0 : i32, i32
  }
  func.func @transform_3(%arg0: i32, %arg1: memref<16xi32, #tpu.memory_space<smem>>) -> (i32, i32) {
    %c0_i32 = arith.constant 0 : i32
    %c0_i32_0 = arith.constant 0 : i32
    %c0_i32_1 = arith.constant 0 : i32
    return %c0_i32, %c0_i32_0 : i32, i32
  }
  func.func @transform_4(%arg0: i32, %arg1: memref<16xi32, #tpu.memory_space<smem>>) -> (i32, i32) {
    %c0_i32 = arith.constant 0 : i32
    %c0_i32_0 = arith.constant 0 : i32
    %c0_i32_1 = arith.constant 0 : i32
    return %c0_i32, %c0_i32_0 : i32, i32
  }
  func.func @transform_6(%arg0: i32, %arg1: memref<16xi32, #tpu.memory_space<smem>>) -> (i32, i32, i32) {
    %c0_i32 = arith.constant 0 : i32
    %c0_i32_0 = arith.constant 0 : i32
    %c0_i32_1 = arith.constant 0 : i32
    return %arg0, %c0_i32, %c0_i32_0 : i32, i32, i32
  }
}

</mosaic_0001>

<bundles_post_ra>
// kernel: tpu_custom_call.1
= control target key start
LH: loop header
LB: loop body
LE: loop exit
PB: predicated region body
PF: predicated region fallthrough
CT: control target
= control target key end

     0   :  { %s1571_s0 = inlined_call_operand.vmem [shape: s32[16], index: 0, kind: input, shape index: {}]   ;;  %s1572_s1 = inlined_call_operand.vmem [shape: f32[8,128], index: 1, kind: input, shape index: {}]   ;;  %s1573_s2 = inlined_call_operand.vmem [shape: f32[128,64], index: 2, kind: input, shape index: {}]   ;;  %s1574_s3 = inlined_call_operand.vmem [shape: f32[1,64], index: 3, kind: input, shape index: {}]   ;;  %s1575_s4 = inlined_call_operand.vmem [shape: f32[64,128], index: 4, kind: input, shape index: {}]   ;;  %s1576_s5 = inlined_call_operand.vmem [shape: f32[1,128], index: 5, kind: input, shape index: {}]   ;;  %s1577_s6 = inlined_call_operand.vmem [shape: f32[64,128], index: 6, kind: input, shape index: {}]   ;;  %s1578_s7 = inlined_call_operand.hbm [shape: f32[2,16,128], index: 7, kind: output, shape index: {}]  }
   0x1   :  { %s12_s26 = sshll.u32 %s1571_s0, 4  ;;  %s13_s26 = int_to_ptr.vmem [resolvable:$true] %s12_s26 }
   0x2   :  { %s1182_s27 = scalar_lea.vmem %s13_s26, 16  ;;  %p1187_p1 = scmp.lt.s32.totalorder %s13_s26, %s13_s26 }
   0x3   :  { %p1183_p0 = scmp.ne.s32.totalorder %s13_s26, %s1182_s27  ;;  %p1188_p2 = scmp.lt.s32.totalorder %s1182_s27, %s1182_s27 }
   0x5   :  { %p1189_p3 = por %p1188_p2, %p1187_p1 }
   0x7   :  { %p1190_p4 = pnand %p1189_p3, %p1183_p0 }
   0x9   :  { %1193 = shalt.err (!%p1190_p4)  }
   0xa   :  { %s1274_s28 = smov [#allocation5]  }
   0xb   :  { %15 = dma.vmem_to_smem %s13_s26, 16, %s1274_s28, [#allocation4] }
   0xc   :  { %1236 = dma.done.wait [#allocation4], 16 }
   0xd   :  { %1237 = vsyncadd [#allocation4], 4294967280 }
   0xe   :  { %17 = sfence }
   0xf   :  { %18 = vsyncpa [#allocation7], 0 }
  0x10   :  { %20 = vsyncpa [#allocation7 + $0x1], 0  ;;  %s1323_s29 = smov 0   ;;  %s1325_s30 = smov 0  }
  0x11   :  { %s1327_s0 = smov 0   ;;  %s1329_s8 = smov 0  }
  0x12 LB: > { %s1344_s9 = sadd.s32 4294967295, %s1272_s8   ;;  %s1036_s10 = sadd.s32 4294967294, %s1272_s8   ;;  %s1272_s8 = sphi %s1329_s8, %s1586_s8   ;;  %s1268_s0 = sphi %s1327_s0, %s1585_s0   ;;  %s1264_s30 = sphi %s1325_s30, %s1584_s30   ;;  %s1260_s29 = sphi %s1323_s29, %s1583_s29  }
  0x13   : > { %s1348_s11 = sadd.s32 1, %s1272_s8   ;;  %s138_s12 = sadd.s32 1, %s1268_s0 }
  0x14   : > { %s135_s13 = ssub.s32 %s1272_s8, %s1348_s11  ;;  %p148_p5 = scmp.ne.s32.totalorder %s1268_s0, %s1264_s30 }
  0x15   : > { %p136_p6 = scmp.eq.s32.totalorder %s135_s13, 0  ;;  %p149_p7 = scmp.eq.s32.totalorder %s1344_s9, 1 }
  0x16   : > { %p154_p8 = scmp.ne.s32.totalorder %s1264_s30, %s1260_s29  ;;  %p155_p9 = scmp.eq.s32.totalorder %s1036_s10, 1 }
  0x17   : > { %s1359_s14 = scalar_select %p136_p6, %s1268_s0, %s138_s12  }
  0x18   : > { %p1361_p10 = por %p149_p7, %p148_p5  ;;  %p1365_p11 = por %p155_p9, %p154_p8 }
  0x19   : > { %p1038_p12 = scmp.ge.s32.totalorder %s1272_s8, 1  ;;  %p188_p13 = scmp.lt.s32.totalorder %s1272_s8, 3 }
  0x1b   : > { %p189_p0 = pnand %p1038_p12, %p188_p13 }
  0x1c   : > { %s1579_s17 = sand.u32 (!%p189_p0), 1, %s1264_s30   ;;  %s1373_s18 = sshll.u32 (!%p189_p0), %s1344_s9, 3 }
  0x1d   : > { %192 = sbr.rel (%p189_p0) target bundleno = 577 (0x241), region = 40  ;;  %s1039_s19 = sshll.u32 (!%p189_p0), %s1579_s17, 4 }
  0x1e   : > { %s212_s20 = sld [smem:[#allocation5 + %s1373_s18]] (!%p189_p0)  ;;  %s1381_s24 = scalar_lea.vmem (!%p189_p0), [#allocation6], %s1039_s19 }
  0x24   : > { %s213_s23 = scalar_lea.vmem %s1577_s6, %s212_s20 }
  0x25   : > { %v232_v0 = vld [vmem:[%s213_s23] sm:$0x1] }
  0x26   : > { %233 = vst [vmem:[#allocation2] sm:$0x1] %v232_v0 }
  0x27   : > { %259 = vsyncadd [#allocation3], 16  ;;  %s260_s25 = sadd.s32 1, %s1373_s18 }
  0x28   : > { %s261_s26 = sld [smem:[#allocation5 + %s260_s25]] }
  0x2e   : > { %s262_s10 = scalar_lea.vmem %s1577_s6, %s261_s26 }
  0x2f   : > { %v283_v1 = vld [vmem:[%s262_s10] sm:$0x1] }
  0x30   : > { %284 = vst [vmem:[#allocation2 + $0x1] sm:$0x1] %v283_v1 }
  0x31   : > { %310 = vsyncadd [#allocation3 + $0x1], 16  ;;  %s311_s12 = sadd.s32 2, %s1373_s18 }
  0x32   : > { %s312_s13 = sld [smem:[#allocation5 + %s311_s12]] }
  0x38   : > { %s313_s22 = scalar_lea.vmem %s1577_s6, %s312_s13 }
  0x39   : > { %v334_v2 = vld [vmem:[%s313_s22] sm:$0x1] }
  0x3a   : > { %335 = vst [vmem:[#allocation2 + $0x2] sm:$0x1] %v334_v2 }
  0x3b   : > { %361 = vsyncadd [#allocation3 + $0x2], 16  ;;  %s362_s19 = sadd.s32 3, %s1373_s18 }
  0x3c   : > { %s363_s23 = sld [smem:[#allocation5 + %s362_s19]] }
  0x42   : > { %s364_s26 = scalar_lea.vmem %s1577_s6, %s363_s23 }
  0x43   : > { %v385_v3 = vld [vmem:[%s364_s26] sm:$0x1] }
  0x44   : > { %386 = vst [vmem:[#allocation2 + $0x3] sm:$0x1] %v385_v3 }
  0x45   : > { %412 = vsyncadd [#allocation3 + $0x3], 16  ;;  %s413_s27 = sadd.s32 4, %s1373_s18 }
  0x46   : > { %s414_s28 = sld [smem:[#allocation5 + %s413_s27]] }
  0x4c   : > { %s415_s13 = scalar_lea.vmem %s1577_s6, %s414_s28 }
  0x4d   : > { %v436_v4 = vld [vmem:[%s415_s13] sm:$0x1] }
  0x4e   : > { %437 = vst [vmem:[#allocation2 + $0x4] sm:$0x1] %v436_v4 }
  0x4f   : > { %463 = vsyncadd [#allocation3 + $0x4], 16  ;;  %s464_s21 = sadd.s32 5, %s1373_s18 }
  0x50   : > { %s465_s20 = sld [smem:[#allocation5 + %s464_s21]] }
  0x56   : > { %s466_s17 = scalar_lea.vmem %s1577_s6, %s465_s20 }
  0x57   : > { %v487_v5 = vld [vmem:[%s466_s17] sm:$0x1] }
  0x58   : > { %488 = vst [vmem:[#allocation2 + $0x5] sm:$0x1] %v487_v5 }
  0x59   : > { %514 = vsyncadd [#allocation3 + $0x5], 16  ;;  %s515_s23 = sadd.s32 6, %s1373_s18 }
  0x5a   : > { %s516_s25 = sld [smem:[#allocation5 + %s515_s23]] }
  0x60   : > { %s517_s28 = scalar_lea.vmem %s1577_s6, %s516_s25 }
  0x61   : > { %v538_v6 = vld [vmem:[%s517_s28] sm:$0x1] }
  0x62   : > { %539 = vst [vmem:[#allocation2 + $0x6] sm:$0x1] %v538_v6 }
  0x63   : > { %565 = vsyncadd [#allocation3 + $0x6], 16  ;;  %s566_s10 = sadd.s32 7, %s1373_s18 }
  0x64   : > { %s567_s12 = sld [smem:[#allocation5 + %s566_s10]] }
  0x6a   : > { %s568_s20 = scalar_lea.vmem %s1577_s6, %s567_s12 }
  0x6b   : > { %v589_v7 = vld [vmem:[%s568_s20] sm:$0x1] }
  0x6c   : > { %590 = vst [vmem:[#allocation2 + $0x7] sm:$0x1] %v589_v7 }
  0x6d   : > { %616 = vsyncadd [#allocation3 + $0x7], 16  ;;  %v633_v8 = vld [vmem:[%s1573_s2 + $0x78] sm:$0xff]  ;;  %v1275_v9 = vmov 0.0   ;;  %v632_v10 = vld [vmem:[%s1573_s2 + $0x70] sm:$0xff]  ;;  %vm1276_vm0 = vmmov 0  }
  0x6e   : > { %1084 = vmatprep.subr.mxu0 %v1275_v9  ;;  %1116 = vmatprep.mubr.msk.f32.mxu0 %vm1276_vm0, %v1275_v9  ;;  %v631_v11 = vld [vmem:[%s1573_s2 + $0x68] sm:$0xff]  ;;  %v630_v12 = vld [vmem:[%s1573_s2 + $0x60] sm:$0xff]  ;;  %v719_v13 = vld [vmem:[%s1575_s4 + $0x38] sm:$0xff]  ;;  %vm727_vm1 = vcmask 523264  }
  0x6f   : > { %1085 = vmatpush3.msra.mxu0 %v633_v8  ;;  %1119 = vmatprep.subr.mxu1 %v1275_v9  ;;  %v718_v14 = vld [vmem:[%s1575_s4 + $0x30] sm:$0xff]  ;;  %v629_v15 = vld [vmem:[%s1573_s2 + $0x58] sm:$0xff]  ;;  %v717_v16 = vld [vmem:[%s1575_s4 + $0x28] sm:$0xff] }
  0x70   : > { %1086 = vmatprep.subr.mxu0 %v1275_v9  ;;  %1135 = vmatprep.mubr.msk.f32.mxu1 %vm1276_vm0, %v1275_v9  ;;  %v628_v17 = vld [vmem:[%s1573_s2 + $0x50] sm:$0xff]  ;;  %v716_v18 = vld [vmem:[%s1575_s4 + $0x20] sm:$0xff]  ;;  %v627_v19 = vld [vmem:[%s1573_s2 + $0x48] sm:$0xff] }
  0x71   : > { %1087 = vmatpush3.msra.mxu0 %v632_v10  ;;  %1120 = vmatpush3.msra.mxu1 %v719_v13  ;;  %v715_v20 = vld [vmem:[%s1575_s4 + $0x18] sm:$0xff]  ;;  %v626_v21 = vld [vmem:[%s1573_s2 + $0x40] sm:$0xff]  ;;  %v624_v23 = vld [vmem:[%s1573_s2 + $0x30] sm:$0xff] }
  0x72   : > { %1088 = vmatprep.subr.mxu0 %v1275_v9  ;;  %1121 = vmatprep.subr.mxu1 %v1275_v9  ;;  %v625_v22 = vld [vmem:[%s1573_s2 + $0x38] sm:$0xff]  ;;  %v623_v24 = vld [vmem:[%s1573_s2 + $0x28] sm:$0xff]  ;;  %v622_v25 = vld [vmem:[%s1573_s2 + $0x20] sm:$0xff] }
  0x73   : > { %1089 = vmatpush3.msra.mxu0 %v631_v11  ;;  %1122 = vmatpush3.msra.mxu1 %v718_v14  ;;  %v621_v26 = vld [vmem:[%s1573_s2 + $0x18] sm:$0xff]  ;;  %v620_v27 = vld [vmem:[%s1573_s2 + $0x10] sm:$0xff]  ;;  %v619_v28 = vld [vmem:[%s1573_s2 + $0x8] sm:$0xff] }
  0x74   : > { %1090 = vmatprep.subr.mxu0 %v1275_v9  ;;  %1123 = vmatprep.subr.mxu1 %v1275_v9  ;;  %v618_v29 = vld [vmem:[%s1573_s2] sm:$0xff]  ;;  %v714_v31 = vld [vmem:[%s1575_s4 + $0x10] sm:$0xff]  ;;  %v713_v32 = vld [vmem:[%s1575_s4 + $0x8] sm:$0xff] }
  0x75   : > { %1091 = vmatpush3.msra.mxu0 %v630_v12  ;;  %1124 = vmatpush3.msra.mxu1 %v717_v16  ;;  %v617_v30 = vld [vmem:[%s1572_s1] sm:$0xff] }
  0x76   : > { %1092 = vmatprep.subr.mxu0 %v1275_v9  ;;  %1125 = vmatprep.subr.mxu1 %v1275_v9  ;;  %v712_v33 = vld [vmem:[%s1575_s4] sm:$0xff] }
  0x77   : > { %1093 = vmatpush3.msra.mxu0 %v629_v15  ;;  %1126 = vmatpush3.msra.mxu1 %v716_v18  ;;  %v1041_v34 = vld [vmem:[%s1574_s3] ss:$0 sm:$0xff] }
  0x78   : > { %1094 = vmatprep.subr.mxu0 %v1275_v9  ;;  %1127 = vmatprep.subr.mxu1 %v1275_v9  ;;  %v1042_v39 = vld [vmem:[%s1576_s5] ss:$0 sm:$0xff] }
  0x79   : > { %1095 = vmatpush3.msra.mxu0 %v628_v17  ;;  %1128 = vmatpush3.msra.mxu1 %v715_v20 }
  0x7a   : > { %1096 = vmatprep.subr.mxu0 %v1275_v9  ;;  %1129 = vmatprep.subr.mxu1 %v1275_v9 }
  0x7b   : > { %1097 = vmatpush3.msra.mxu0 %v627_v19  ;;  %1130 = vmatpush3.msra.mxu1 %v714_v31 }
  0x7c   : > { %1098 = vmatprep.subr.mxu0 %v1275_v9  ;;  %1131 = vmatprep.subr.mxu1 %v1275_v9 }
  0x7d   : > { %1099 = vmatpush3.msra.mxu0 %v626_v21  ;;  %1132 = vmatpush3.msra.mxu1 %v713_v32 }
  0x7e   : > { %1100 = vmatprep.subr.mxu0 %v1275_v9  ;;  %1133 = vmatprep.subr.mxu1 %v1275_v9 }
  0x7f   : > { %1101 = vmatpush3.msra.mxu0 %v625_v22  ;;  %1134 = vmatpush3.msra.mxu1 %v712_v33 }
  0x80   : > { %1102 = vmatprep.subr.mxu0 %v1275_v9 }
  0x81   : > { %1103 = vmatpush3.msra.mxu0 %v624_v23 }
  0x82   : > { %1104 = vmatprep.subr.mxu0 %v1275_v9 }
  0x83   : > { %1105 = vmatpush3.msra.mxu0 %v623_v24 }
  0x84   : > { %1106 = vmatprep.subr.mxu0 %v1275_v9 }
  0x85   : > { %1107 = vmatpush3.msra.mxu0 %v622_v25 }
  0x86   : > { %1108 = vmatprep.subr.mxu0 %v1275_v9 }
  0x87   : > { %1109 = vmatpush3.msra.mxu0 %v621_v26 }
  0x88   : > { %1110 = vmatprep.subr.mxu0 %v1275_v9 }
  0x89   : > { %1111 = vmatpush3.msra.mxu0 %v620_v27 }
  0x8a   : > { %1112 = vmatprep.subr.mxu0 %v1275_v9 }
  0x8b   : > { %1113 = vmatpush3.msra.mxu0 %v619_v28 }
  0x8c   : > { %1114 = vmatprep.subr.mxu0 %v1275_v9 }
  0x8d   : > { %1115 = vmatpush3.msra.mxu0 %v618_v29 }
  0x8e   : > { %1117 = vmatmul.mubr.f32.vlgmr.msra.gmra.mxu0 %v617_v30 }
 0x14e   : > { %v707_v35 = vpop.f32.mrf.mxu0 }
 0x14f   : > { %v708_v36 = vadd.f32 %v1041_v34, %v707_v35 }
 0x150   : > { %v1118_v37 = vpop.f32.mrf.mxu0 }
 0x151   : > { %v711_v38 = vmax.f32 %v708_v36, 0.0 }
 0x153   : > { %1136 = vmatmul.mubr.msk.f32.vlgmr.msra.gmra.mxu1 %vm727_vm1, %v711_v38 }
 0x213   : > { %v797_v40 = vpop.f32.mrf.mxu1 }
 0x214   : > { %v798_v41 = vadd.f32 %v1042_v39, %v797_v40 }
 0x215   : > { %v1137_v42 = vpop.f32.mrf.mxu1 }
 0x216   : > { %v801_v43 = vadd.f32 %v798_v41, %v617_v30 }
 0x218   : > { %802 = vst [vmem:[%s1381_s24] sm:$0xff] %v801_v43 }
 0x219   : > { %1238 = dma.done.wait [#allocation3], 16 }
 0x21a   : > { %1239 = vsyncadd [#allocation3], 4294967280 }
 0x21b   : > { %1240 = dma.done.wait [#allocation3 + $0x1], 16 }
 0x21c   : > { %1241 = vsyncadd [#allocation3 + $0x1], 4294967280 }
 0x21d   : > { %1242 = dma.done.wait [#allocation3 + $0x2], 16 }
 0x21e   : > { %1243 = vsyncadd [#allocation3 + $0x2], 4294967280 }
 0x21f   : > { %1244 = dma.done.wait [#allocation3 + $0x3], 16 }
 0x220   : > { %1245 = vsyncadd [#allocation3 + $0x3], 4294967280 }
 0x221   : > { %1246 = dma.done.wait [#allocation3 + $0x4], 16 }
 0x222   : > { %1247 = vsyncadd [#allocation3 + $0x4], 4294967280 }
 0x223   : > { %1248 = dma.done.wait [#allocation3 + $0x5], 16 }
 0x224   : > { %1249 = vsyncadd [#allocation3 + $0x5], 4294967280 }
 0x225   : > { %1250 = dma.done.wait [#allocation3 + $0x6], 16 }
 0x226   : > { %1251 = vsyncadd [#allocation3 + $0x6], 4294967280 }
 0x227   : > { %1252 = dma.done.wait [#allocation3 + $0x7], 16 }
 0x228   : > { %1253 = vsyncadd [#allocation3 + $0x7], 4294967280  ;;  %s1057_s21 = sshll.u32 %s1344_s9, 8  ;;  %s836_s20 = sshll.u32 %s1381_s24, 4  ;;  %v820_v44 = vld [vmem:[#allocation2] sm:$0xff]  ;;  %s1526_s20 = int_to_ptr.vmem [resolvable:$true] %s836_s20 }
 0x229   : > { %s1524_s17 = scalar_lea.hbm %s1578_s7, %s1057_s21  ;;  %821 = vst [vmem:[%s1381_s24 + $0x8] sm:$0xff] %v820_v44  ;;  %s1582_s23 = sand.u32 1, %s1264_s30  }
 0x22a   : > { %s1531_s18 = scalar_lea.sflag [#allocation7], %s1582_s23  ;;  %s1194_s25 = scalar_lea.vmem %s1526_s20, 256 }
 0x22b   : > { %p1195_p1 = scmp.ne.s32.totalorder %s1526_s20, %s1194_s25  ;;  %s1277_s9 = smov [#allocation6]  }
 0x22c   : > { %s1198_s26 = sshll.u32 %s1277_s9, 4  ;;  %s1199_s26 = int_to_ptr.vmem [resolvable:$false] %s1198_s26 }
 0x22d   : > { %p1196_p2 = pnand %p1195_p1, %p1361_p10  ;;  %s1200_s27 = scalar_lea.vmem %s1199_s26, 512 }
 0x22e   : > { %p1201_p4 = scmp.lt.s32.totalorder %s1526_s20, %s1199_s26  ;;  %p1202_p5 = scmp.lt.s32.totalorder %s1200_s27, %s1194_s25 }
 0x22f   : > { %p1197_p3 = pneg %p1196_p2 }
 0x230   : > { %p1203_p6 = por %p1202_p5, %p1201_p4 }
 0x232   : > { %p1204_p7 = pnand %p1203_p6, %p1197_p3 }
 0x234   : > { %1207 = shalt.err (!%p1204_p7)
}
 0x235   : > { %s1208_s24 = scalar_lea.hbm %s1524_s17, 256  ;;  %s1212_s12 = scalar_lea.hbm %s1578_s7, 512 }
 0x236   : > { %p1209_p8 = scmp.ne.s32.totalorder %s1524_s17, %s1208_s24  ;;  %p1213_p13 = scmp.lt.s32.totalorder %s1524_s17, %s1578_s7 }
 0x237   : > { %p1214_p0 = scmp.lt.s32.totalorder %s1212_s12, %s1208_s24 }
 0x238   : > { %p1210_p9 = pnand %p1209_p8, %p1361_p10 }
 0x239   : > { %p1215_p1 = por %p1214_p0, %p1213_p13 }
 0x23a   : > { %p1211_p12 = pneg %p1210_p9 }
 0x23c   : > { %p1216_p2 = pnand %p1215_p1, %p1211_p12 }
 0x23e   : > { %1219 = shalt.err (!%p1216_p2)
}
 0x23f   : > { %s1278_s22 = smov 128   ;;  %s1279_s19 = smov 8  }
 0x240   : > { %1138 = dma.vmem_to_hbm [thread:$0]  (%p1361_p10), %s1526_s20, 256, %s1524_s17, %s1531_s18, %s1278_s22, %s1278_s22, %s1279_s19  }
 0x241 PF: > { %p1144_p3 = scmp.ge.s32.totalorder %s1272_s8, 2  ;;  %s851_s23 = sand.u32 1, %s1260_s29  }
 0x242   : > { %s852_s25 = scalar_lea.sflag [#allocation7], %s851_s23 }
 0x243   : > { %p1141_p4 = pnand %p1144_p3, %p1365_p11 }
 0x245   : > { %p1142_p5 = pneg %p1141_p4 }
 0x247   : > { %1255 = dma.done.wait (%p1142_p5), %s852_s25, 256  }
 0x248   : > { %1257 = vsyncadd (%p1142_p5), %s852_s25, 4294967040  ;;  %p23_p6 = scmp.ge.s32.totalorder %s1348_s11, 4   ;;  %s1583_s29 = smov %s1264_s30 }
 0x249   : > { %s1584_s30 = smov %s1268_s0  ;;  %s1585_s0 = smov %s1359_s14 }
 0x24a   : > { %s1586_s8 = smov %s1348_s11  ;;  %25 = sbr.rel (!%p23_p6) target bundleno = 18 (0x12), region = 421 }
 0x24f   :  { %857 = vsyncpa [#allocation7], 1 }
 0x250   :  { %859 = vsyncpa [#allocation7 + $0x1], 1 }
 0x251   :  { %860 = vsyncmov [#allocation3] }
 0x254   :  { %s861_s8 = vpop.sfrf %860 }
 0x255   :  { %p1049_p10 = scmp.ne.s32.totalorder %s861_s8, 0 }
 0x257   :  { %865 = shalt.err (%p1049_p10)  }
 0x258   :  { %867 = vsyncmov [#allocation3 + $0x1] }
 0x25b   :  { %s868_s15 = vpop.sfrf %867 }
 0x25c   :  { %p1050_p11 = scmp.ne.s32.totalorder %s868_s15, 0 }
 0x25e   :  { %872 = shalt.err (%p1050_p11)  }
 0x25f   :  { %874 = vsyncmov [#allocation3 + $0x2] }
 0x262   :  { %s875_s16 = vpop.sfrf %874 }
 0x263   :  { %p1051_p7 = scmp.ne.s32.totalorder %s875_s16, 0 }
 0x265   :  { %879 = shalt.err (%p1051_p7)  }
 0x266   :  { %881 = vsyncmov [#allocation3 + $0x3] }
 0x269   :  { %s882_s20 = vpop.sfrf %881 }
 0x26a   :  { %p1052_p8 = scmp.ne.s32.totalorder %s882_s20, 0 }
 0x26c   :  { %886 = shalt.err (%p1052_p8)  }
 0x26d   :  { %888 = vsyncmov [#allocation3 + $0x4] }
 0x270   :  { %s889_s11 = vpop.sfrf %888 }
 0x271   :  { %p1053_p9 = scmp.ne.s32.totalorder %s889_s11, 0 }
 0x273   :  { %893 = shalt.err (%p1053_p9)  }
 0x274   :  { %895 = vsyncmov [#allocation3 + $0x5] }
 0x277   :  { %s896_s1 = vpop.sfrf %895 }
 0x278   :  { %p1054_p12 = scmp.ne.s32.totalorder %s896_s1, 0 }
 0x27a   :  { %900 = shalt.err (%p1054_p12)  }
 0x27b   :  { %902 = vsyncmov [#allocation3 + $0x6] }
 0x27e   :  { %s903_s2 = vpop.sfrf %902 }
 0x27f   :  { %p1055_p13 = scmp.ne.s32.totalorder %s903_s2, 0 }
 0x281   :  { %907 = shalt.err (%p1055_p13)  }
 0x282   :  { %909 = vsyncmov [#allocation3 + $0x7] }
 0x285   :  { %s910_s3 = vpop.sfrf %909 }
 0x286   :  { %p1056_p0 = scmp.ne.s32.totalorder %s910_s3, 0 }
 0x288   :  { %914 = shalt.err (%p1056_p0)  }

</bundles_post_ra>
